<compile_context>
chip_gen: v6e
topology: v6e:2x2x1
jax: 0.10.0
libtpu: 0.0.40
codegen_flags: <defaults>
</compile_context>

<pallas_src>
import functools

import jax
import jax.numpy as jnp
from jax.experimental import pallas as pl
from jax.experimental.pallas import tpu as pltpu

# ------------------------- synthetic configuration -------------------------
N_CLS = 1                 # classnames = ['object']
NORMAL_NUM = 1            # state_normal_list = ['{}']
ANOMALY_NUM = 1           # state_anomaly_list = ['damaged {}']
N_CTX_POS = 4             # design_details['Normal_Prompt_Length']
N_CTX_NEG = 4             # design_details['Anomaly_Prompt_Length']
TEXT_ENCODER_N_CTX = 4    # design_details['Deep_Text_Prompt_Length']
COMPOUND_DEPTH = 2        # design_details['Deep_Text_Prompt_Depth']
CTX_DIM = 128             # ctx_dim (small, lane aligned)
CONTEXT_LEN = 16          # small stand-in for CLIP's 77-token context
DTYPE = jnp.float32

SUF_POS_LEN = CONTEXT_LEN - 1 - N_CTX_POS
SUF_NEG_LEN = CONTEXT_LEN - 1 - N_CTX_POS - N_CTX_NEG


# ------------------------------ Pallas kernel ------------------------------
def _assemble_prompts_kernel(emb_ref, ctx_pos_ref, ctx_neg_ref, out_ref, *,
                             n_ctx_pos, n_ctx_neg):
    """Fused assembly of all 4 prompt rows.

    emb_ref:     (4, L, d) full token embeddings, row order
                 [global_pos, global_neg, local_pos, local_neg].
                 Row r already holds prefix at [:1] and suffix at its slot.
    ctx_pos_ref: (2, n_ctx_pos, d)  learnable positive ctx [global, local]
    ctx_neg_ref: (2, n_ctx_neg, d)  learnable negative ctx [global, local]
    out_ref:     (4, L, d)

      out[2g  ] = [prefix | ctx_pos            | suffix_pos]
      out[2g+1] = [prefix | ctx_pos | ctx_neg  | suffix_neg]

    Each row is composed in vregs and written with a single full-tile store
    (no masked sublane partial stores).
    """
    for g in range(2):                      # 0 = global, 1 = local (static unroll)
        pos_r, neg_r = 2 * g, 2 * g + 1
        ctx_p = ctx_pos_ref[g]              # (n_ctx_pos, d)
        ctx_n = ctx_neg_ref[g]              # (n_ctx_neg, d)
        emb_pos = emb_ref[pos_r]            # (L, d)
        emb_neg = emb_ref[neg_r]            # (L, d)

        # positive prompt row: [prefix | ctx_pos | suffix]  -> one full store
        out_ref[pos_r] = jnp.concatenate(
            [emb_pos[:1], ctx_p, emb_pos[1 + n_ctx_pos:]], axis=0)

        # negative prompt row: [prefix | ctx_pos | ctx_neg | suffix]
        out_ref[neg_r] = jnp.concatenate(
            [emb_neg[:1], ctx_p, ctx_n,
             emb_neg[1 + n_ctx_pos + n_ctx_neg:]], axis=0)


@functools.partial(jax.jit, static_argnames=("n_ctx_pos", "n_ctx_neg"))
def assemble_prompts(emb_full, ctx_pos, ctx_neg, *, n_ctx_pos, n_ctx_neg):
    """Single fused pallas_call: returns (4, context_len, ctx_dim) prompts."""
    n_rows, context_len, d = emb_full.shape
    kernel = functools.partial(_assemble_prompts_kernel,
                               n_ctx_pos=n_ctx_pos, n_ctx_neg=n_ctx_neg)
    vmem = pl.BlockSpec(memory_space=pltpu.MemorySpace.VMEM)
    return pl.pallas_call(
        kernel,
        out_shape=jax.ShapeDtypeStruct((n_rows, context_len, d),
                                       emb_full.dtype),
        in_specs=[vmem, vmem, vmem],
        out_specs=vmem,
    )(emb_full, ctx_pos, ctx_neg)


# ------------------------- module (parameters + fwd) ------------------------
class GlocalCLIPPromptLearnerPallas:
    def __init__(self, key):
        std = 0.02
        ks = jax.random.split(key, 16)

        # learnable contexts: (n_cls, 1, n_ctx, ctx_dim)
        self.ctx_global_pos = std * jax.random.normal(ks[0], (N_CLS, 1, N_CTX_POS, CTX_DIM), DTYPE)
        self.ctx_global_neg = std * jax.random.normal(ks[1], (N_CLS, 1, N_CTX_NEG, CTX_DIM), DTYPE)
        self.ctx_local_pos = std * jax.random.normal(ks[2], (N_CLS, 1, N_CTX_POS, CTX_DIM), DTYPE)
        self.ctx_local_neg = std * jax.random.normal(ks[3], (N_CLS, 1, N_CTX_NEG, CTX_DIM), DTYPE)

        # synthetic token embeddings (stand-in for clip_model.token_embedding)
        # shape (n_cls, num, context_len, ctx_dim)
        emb_g_pos = std * jax.random.normal(ks[4], (N_CLS, NORMAL_NUM, CONTEXT_LEN, CTX_DIM), DTYPE)
        emb_g_neg = std * jax.random.normal(ks[5], (N_CLS, ANOMALY_NUM, CONTEXT_LEN, CTX_DIM), DTYPE)
        emb_l_pos = std * jax.random.normal(ks[6], (N_CLS, NORMAL_NUM, CONTEXT_LEN, CTX_DIM), DTYPE)
        emb_l_neg = std * jax.random.normal(ks[7], (N_CLS, ANOMALY_NUM, CONTEXT_LEN, CTX_DIM), DTYPE)

        # prefix/suffix buffers (kept for parity with register_buffer semantics
        # and for the reference check)
        self.token_prefix_global_pos = emb_g_pos[:, :, :1, :]
        self.token_suffix_global_pos = emb_g_pos[:, :, 1 + N_CTX_POS:, :]
        self.token_prefix_global_neg = emb_g_neg[:, :, :1, :]
        self.token_suffix_global_neg = emb_g_neg[:, :, 1 + N_CTX_POS + N_CTX_NEG:, :]
        self.token_prefix_local_pos = emb_l_pos[:, :, :1, :]
        self.token_suffix_local_pos = emb_l_pos[:, :, 1 + N_CTX_POS:, :]
        self.token_prefix_local_neg = emb_l_neg[:, :, :1, :]
        self.token_suffix_local_neg = emb_l_neg[:, :, 1 + N_CTX_POS + N_CTX_NEG:, :]

        # stacked full embeddings, precomputed once (non-learnable buffer):
        # row order [global_pos, global_neg, local_pos, local_neg].
        # They already contain prefix/suffix at the right sequence positions,
        # so the per-forward kernel only has to splice in the ctx rows.
        self.emb_full = jnp.stack(
            [emb_g_pos[0, 0], emb_g_neg[0, 0], emb_l_pos[0, 0], emb_l_neg[0, 0]],
            axis=0)  # (4, CONTEXT_LEN, CTX_DIM)

        # synthetic tokenized prompts: (n_cls, num, context_len) int32
        self.tokenized_prompts_global_pos = jax.random.randint(
            ks[8], (N_CLS, NORMAL_NUM, CONTEXT_LEN), 0, 1000, jnp.int32)
        self.tokenized_prompts_global_neg = jax.random.randint(
            ks[9], (N_CLS, ANOMALY_NUM, CONTEXT_LEN), 0, 1000, jnp.int32)
        self.tokenized_prompts_local_pos = jax.random.randint(
            ks[10], (N_CLS, NORMAL_NUM, CONTEXT_LEN), 0, 1000, jnp.int32)
        self.tokenized_prompts_local_neg = jax.random.randint(
            ks[11], (N_CLS, ANOMALY_NUM, CONTEXT_LEN), 0, 1000, jnp.int32)

        # deep compound text prompts: list of (text_encoder_n_ctx, ctx_dim)
        self.compound_prompts_text = [
            std * jax.random.normal(ks[12 + i], (TEXT_ENCODER_N_CTX, CTX_DIM), DTYPE)
            for i in range(COMPOUND_DEPTH - 1)
        ]

    def __call__(self, cls_id=None):
        # n_cls == normal_num == anormaly_num == 1, so (n_cls,1,n,d) -> (n,d).
        # Stack learnable ctx params per forward (they may change between
        # steps when training); this is trivial glue fused under jit.
        ctx_pos = jnp.stack([self.ctx_global_pos[0, 0],
                             self.ctx_local_pos[0, 0]], axis=0)   # (2, n_ctx_pos, d)
        ctx_neg = jnp.stack([self.ctx_global_neg[0, 0],
                             self.ctx_local_neg[0, 0]], axis=0)   # (2, n_ctx_neg, d)

        # hot path: ONE fused Pallas kernel assembles all 4 prompt rows
        prompts = assemble_prompts(self.emb_full, ctx_pos, ctx_neg,
                                   n_ctx_pos=N_CTX_POS, n_ctx_neg=N_CTX_NEG)
        global_prompts = prompts[:2]   # (2, L, d)
        local_prompts = prompts[2:]    # (2, L, d)

        # glue: int-token concatenation
        global_tokenized_prompts = jnp.concatenate(
            [self.tokenized_prompts_global_pos.reshape(-1, CONTEXT_LEN),
             self.tokenized_prompts_global_neg.reshape(-1, CONTEXT_LEN)], axis=0)
        local_tokenized_prompts = jnp.concatenate(
            [self.tokenized_prompts_local_pos.reshape(-1, CONTEXT_LEN),
             self.tokenized_prompts_local_neg.reshape(-1, CONTEXT_LEN)], axis=0)

        return (global_prompts, global_tokenized_prompts,
                local_prompts, local_tokenized_prompts,
                self.compound_prompts_text)


# -------------------------------- reference --------------------------------
def _reference_prompts(pref_p, ctx_p, suf_p, pref_n, ctx_p2, ctx_n, suf_n):
    pos = jnp.concatenate([pref_p, ctx_p, suf_p], axis=0)[None]
    neg = jnp.concatenate([pref_n, ctx_p2, ctx_n, suf_n], axis=0)[None]
    return jnp.concatenate([pos, neg], axis=0)


if __name__ == "__main__":
    key = jax.random.PRNGKey(0)
    learner = GlocalCLIPPromptLearnerPallas(key)

    (global_prompts, global_tok, local_prompts, local_tok,
     compound_prompts) = learner()

    jax.block_until_ready(global_prompts)
    jax.block_until_ready(local_prompts)
    jax.block_until_ready(global_tok)
    jax.block_until_ready(local_tok)
    for p in compound_prompts:
        jax.block_until_ready(p)

    # correctness check against pure-JAX concatenation semantics
    ref_global = _reference_prompts(
        learner.token_prefix_global_pos[0, 0], learner.ctx_global_pos[0, 0],
        learner.token_suffix_global_pos[0, 0],
        learner.token_prefix_global_neg[0, 0], learner.ctx_global_pos[0, 0],
        learner.ctx_global_neg[0, 0], learner.token_suffix_global_neg[0, 0])
    ref_local = _reference_prompts(
        learner.token_prefix_local_pos[0, 0], learner.ctx_local_pos[0, 0],
        learner.token_suffix_local_pos[0, 0],
        learner.token_prefix_local_neg[0, 0], learner.ctx_local_pos[0, 0],
        learner.ctx_local_neg[0, 0], learner.token_suffix_local_neg[0, 0])

    assert global_prompts.shape == (2, CONTEXT_LEN, CTX_DIM)
    assert local_prompts.shape == (2, CONTEXT_LEN, CTX_DIM)
    assert global_tok.shape == (2, CONTEXT_LEN) and global_tok.dtype == jnp.int32
    assert local_tok.shape == (2, CONTEXT_LEN) and local_tok.dtype == jnp.int32
    assert jnp.allclose(global_prompts, ref_global)
    assert jnp.allclose(local_prompts, ref_local)

    print("KERNEL_OK")
</pallas_src>

<mosaic_0001>
module attributes {stable_mosaic.version = 11 : i64} {
  func.func @_assemble_prompts_kernel(%arg0: memref<4x16x128xf32, #tpu.memory_space<vmem>>, %arg1: memref<2x4x128xf32, #tpu.memory_space<vmem>>, %arg2: memref<2x4x128xf32, #tpu.memory_space<vmem>>, %arg3: memref<4x16x128xf32, #tpu.memory_space<vmem>>) attributes {dimension_semantics = [], scalar_prefetch = 0 : i64, scratch_operands = 0 : i64, tpu.core_type = #tpu.core_type<tc>} {
    %c0 = arith.constant 0 : index
    %c0_0 = arith.constant 0 : index
    %c0_1 = arith.constant 0 : index
    %0 = vector.load %arg1[%c0, %c0_0, %c0_1] : memref<2x4x128xf32, #tpu.memory_space<vmem>>, vector<1x4x128xf32>
    %1 = vector.shape_cast %0 : vector<1x4x128xf32> to vector<4x128xf32>
    %c0_2 = arith.constant 0 : index
    %c0_3 = arith.constant 0 : index
    %c0_4 = arith.constant 0 : index
    %2 = vector.load %arg2[%c0_2, %c0_3, %c0_4] : memref<2x4x128xf32, #tpu.memory_space<vmem>>, vector<1x4x128xf32>
    %3 = vector.shape_cast %2 : vector<1x4x128xf32> to vector<4x128xf32>
    %c0_5 = arith.constant 0 : index
    %c0_6 = arith.constant 0 : index
    %c0_7 = arith.constant 0 : index
    %4 = vector.load %arg0[%c0_5, %c0_6, %c0_7] : memref<4x16x128xf32, #tpu.memory_space<vmem>>, vector<1x16x128xf32>
    %5 = vector.shape_cast %4 : vector<1x16x128xf32> to vector<16x128xf32>
    %c1 = arith.constant 1 : index
    %c0_8 = arith.constant 0 : index
    %c0_9 = arith.constant 0 : index
    %6 = vector.load %arg0[%c1, %c0_8, %c0_9] : memref<4x16x128xf32, #tpu.memory_space<vmem>>, vector<1x16x128xf32>
    %7 = vector.shape_cast %6 : vector<1x16x128xf32> to vector<16x128xf32>
    %8 = vector.extract_strided_slice %5 {offsets = [0, 0], sizes = [1, 128], strides = [1, 1]} : vector<16x128xf32> to vector<1x128xf32>
    %9 = vector.extract_strided_slice %5 {offsets = [5, 0], sizes = [11, 128], strides = [1, 1]} : vector<16x128xf32> to vector<11x128xf32>
    %10 = tpu.concatenate %8, %1, %9 in 0 : vector<1x128xf32>, vector<4x128xf32>, vector<11x128xf32> -> vector<16x128xf32>
    %c0_10 = arith.constant 0 : index
    %c0_11 = arith.constant 0 : index
    %c0_12 = arith.constant 0 : index
    %11 = vector.load %arg3[%c0_10, %c0_11, %c0_12] : memref<4x16x128xf32, #tpu.memory_space<vmem>>, vector<1x16x128xf32>
    %12 = vector.shape_cast %11 : vector<1x16x128xf32> to vector<16x128xf32>
    %13 = vector.shape_cast %10 : vector<16x128xf32> to vector<1x16x128xf32>
    tpu.vector_store %arg3[%c0_10, %c0_11, %c0_12], %13 {strides = array<i32>} : memref<4x16x128xf32, #tpu.memory_space<vmem>>, vector<1x16x128xf32>,
    %14 = vector.extract_strided_slice %7 {offsets = [0, 0], sizes = [1, 128], strides = [1, 1]} : vector<16x128xf32> to vector<1x128xf32>
    %15 = vector.extract_strided_slice %7 {offsets = [9, 0], sizes = [7, 128], strides = [1, 1]} : vector<16x128xf32> to vector<7x128xf32>
    %16 = tpu.concatenate %14, %1, %3, %15 in 0 : vector<1x128xf32>, vector<4x128xf32>, vector<4x128xf32>, vector<7x128xf32> -> vector<16x128xf32>
    %c1_13 = arith.constant 1 : index
    %c0_14 = arith.constant 0 : index
    %c0_15 = arith.constant 0 : index
    %17 = vector.load %arg3[%c1_13, %c0_14, %c0_15] : memref<4x16x128xf32, #tpu.memory_space<vmem>>, vector<1x16x128xf32>
    %18 = vector.shape_cast %17 : vector<1x16x128xf32> to vector<16x128xf32>
    %19 = vector.shape_cast %16 : vector<16x128xf32> to vector<1x16x128xf32>
    tpu.vector_store %arg3[%c1_13, %c0_14, %c0_15], %19 {strides = array<i32>} : memref<4x16x128xf32, #tpu.memory_space<vmem>>, vector<1x16x128xf32>,
    %c1_16 = arith.constant 1 : index
    %c0_17 = arith.constant 0 : index
    %c0_18 = arith.constant 0 : index
    %20 = vector.load %arg1[%c1_16, %c0_17, %c0_18] : memref<2x4x128xf32, #tpu.memory_space<vmem>>, vector<1x4x128xf32>
    %21 = vector.shape_cast %20 : vector<1x4x128xf32> to vector<4x128xf32>
    %c1_19 = arith.constant 1 : index
    %c0_20 = arith.constant 0 : index
    %c0_21 = arith.constant 0 : index
    %22 = vector.load %arg2[%c1_19, %c0_20, %c0_21] : memref<2x4x128xf32, #tpu.memory_space<vmem>>, vector<1x4x128xf32>
    %23 = vector.shape_cast %22 : vector<1x4x128xf32> to vector<4x128xf32>
    %c2 = arith.constant 2 : index
    %c0_22 = arith.constant 0 : index
    %c0_23 = arith.constant 0 : index
    %24 = vector.load %arg0[%c2, %c0_22, %c0_23] : memref<4x16x128xf32, #tpu.memory_space<vmem>>, vector<1x16x128xf32>
    %25 = vector.shape_cast %24 : vector<1x16x128xf32> to vector<16x128xf32>
    %c3 = arith.constant 3 : index
    %c0_24 = arith.constant 0 : index
    %c0_25 = arith.constant 0 : index
    %26 = vector.load %arg0[%c3, %c0_24, %c0_25] : memref<4x16x128xf32, #tpu.memory_space<vmem>>, vector<1x16x128xf32>
    %27 = vector.shape_cast %26 : vector<1x16x128xf32> to vector<16x128xf32>
    %28 = vector.extract_strided_slice %25 {offsets = [0, 0], sizes = [1, 128], strides = [1, 1]} : vector<16x128xf32> to vector<1x128xf32>
    %29 = vector.extract_strided_slice %25 {offsets = [5, 0], sizes = [11, 128], strides = [1, 1]} : vector<16x128xf32> to vector<11x128xf32>
    %30 = tpu.concatenate %28, %21, %29 in 0 : vector<1x128xf32>, vector<4x128xf32>, vector<11x128xf32> -> vector<16x128xf32>
    %c2_26 = arith.constant 2 : index
    %c0_27 = arith.constant 0 : index
    %c0_28 = arith.constant 0 : index
    %31 = vector.load %arg3[%c2_26, %c0_27, %c0_28] : memref<4x16x128xf32, #tpu.memory_space<vmem>>, vector<1x16x128xf32>
    %32 = vector.shape_cast %31 : vector<1x16x128xf32> to vector<16x128xf32>
    %33 = vector.shape_cast %30 : vector<16x128xf32> to vector<1x16x128xf32>
    tpu.vector_store %arg3[%c2_26, %c0_27, %c0_28], %33 {strides = array<i32>} : memref<4x16x128xf32, #tpu.memory_space<vmem>>, vector<1x16x128xf32>,
    %34 = vector.extract_strided_slice %27 {offsets = [0, 0], sizes = [1, 128], strides = [1, 1]} : vector<16x128xf32> to vector<1x128xf32>
    %35 = vector.extract_strided_slice %27 {offsets = [9, 0], sizes = [7, 128], strides = [1, 1]} : vector<16x128xf32> to vector<7x128xf32>
    %36 = tpu.concatenate %34, %21, %23, %35 in 0 : vector<1x128xf32>, vector<4x128xf32>, vector<4x128xf32>, vector<7x128xf32> -> vector<16x128xf32>
    %c3_29 = arith.constant 3 : index
    %c0_30 = arith.constant 0 : index
    %c0_31 = arith.constant 0 : index
    %37 = vector.load %arg3[%c3_29, %c0_30, %c0_31] : memref<4x16x128xf32, #tpu.memory_space<vmem>>, vector<1x16x128xf32>
    %38 = vector.shape_cast %37 : vector<1x16x128xf32> to vector<16x128xf32>
    %39 = vector.shape_cast %36 : vector<16x128xf32> to vector<1x16x128xf32>
    tpu.vector_store %arg3[%c3_29, %c0_30, %c0_31], %39 {strides = array<i32>} : memref<4x16x128xf32, #tpu.memory_space<vmem>>, vector<1x16x128xf32>,
    return
  }
}

</mosaic_0001>

<bundles_post_ra>
// kernel: assemble_prompts.1
= control target key start
LH: loop header
LB: loop body
LE: loop exit
PB: predicated region body
PF: predicated region fallthrough
CT: control target
= control target key end

     0   :  { %8 = vsyncpa [#allocation3], 0  ;;  %s276_s0 = inlined_call_operand.hbm [shape: f32[4,16,128], index: 0, kind: input, shape index: {}]   ;;  %s277_s1 = inlined_call_operand.hbm [shape: f32[2,4,128], index: 1, kind: input, shape index: {}]   ;;  %s278_s2 = inlined_call_operand.hbm [shape: f32[2,4,128], index: 2, kind: input, shape index: {}]   ;;  %s279_s3 = inlined_call_operand.hbm [shape: f32[4,16,128], index: 3, kind: output, shape index: {}]  }
   0x1   :  { %9 = vsyncpa [#allocation6], 0 }
   0x2   :  { %10 = vsyncpa [#allocation4], 0  ;;  %s220_s12 = smov [#allocation5]  }
   0x3   :  { %s28_s13 = sshll.u32 %s220_s12, 4  ;;  %s29_s13 = int_to_ptr.vmem [resolvable:$true] %s28_s13 }
   0x4   :  { %s142_s14 = scalar_lea.vmem %s29_s13, 128  ;;  %p147_p1 = scmp.lt.s32.totalorder %s29_s13, %s29_s13 }
   0x5   :  { %p143_p0 = scmp.ne.s32.totalorder %s29_s13, %s142_s14  ;;  %p148_p2 = scmp.lt.s32.totalorder %s142_s14, %s142_s14 }
   0x7   :  { %p149_p3 = por %p148_p2, %p147_p1 }
   0x9   :  { %p150_p4 = pnand %p149_p3, %p143_p0 }
   0xb   :  { %153 = shalt.err (!%p150_p4)
}
   0xc   :  { %s221_s15 = smov 64   ;;  %s222_s16 = smov 4  }
   0xd   :  { %34 = dma.hbm_to_vmem [thread:$0]  %s277_s1, 128, %s29_s13, [#allocation6], %s221_s15, %s221_s15, %s222_s16  }
   0xe   :  { %s223_s19 = smov [#allocation2]  }
   0xf   :  { %s16_s20 = sshll.u32 %s223_s19, 4  ;;  %s17_s20 = int_to_ptr.vmem [resolvable:$true] %s16_s20 }
  0x10   :  { %s162_s21 = scalar_lea.vmem %s17_s20, 1024  ;;  %p167_p6 = scmp.lt.s32.totalorder %s17_s20, %s17_s20 }
  0x11   :  { %p163_p5 = scmp.ne.s32.totalorder %s17_s20, %s162_s21  ;;  %p168_p7 = scmp.lt.s32.totalorder %s162_s21, %s162_s21 }
  0x13   :  { %p169_p8 = por %p168_p7, %p167_p6 }
  0x15   :  { %p170_p9 = pnand %p169_p8, %p163_p5 }
  0x17   :  { %173 = shalt.err (!%p170_p9)
}
  0x18   :  { %s224_s22 = smov 128   ;;  %s225_s23 = smov 8  }
  0x19   :  { %22 = dma.hbm_to_vmem [thread:$0]  %s276_s0, 1024, %s17_s20, [#allocation3], %s224_s22, %s224_s22, %s225_s23  }
  0x1a   :  { %s226_s1 = smov [#allocation7]  }
  0x1b   :  { %s40_s26 = sshll.u32 %s226_s1, 4  ;;  %s41_s26 = int_to_ptr.vmem [resolvable:$true] %s40_s26 }
  0x1c   :  { %s182_s27 = scalar_lea.vmem %s41_s26, 128  ;;  %p187_p11 = scmp.lt.s32.totalorder %s41_s26, %s41_s26 }
  0x1d   :  { %p183_p10 = scmp.ne.s32.totalorder %s41_s26, %s182_s27  ;;  %p188_p12 = scmp.lt.s32.totalorder %s182_s27, %s182_s27 }
  0x1f   :  { %p189_p13 = por %p188_p12, %p187_p11 }
  0x21   :  { %p190_p0 = pnand %p189_p13, %p183_p10 }
  0x23   :  { %193 = shalt.err (!%p190_p0)
}
  0x24   :  { %46 = dma.hbm_to_vmem [thread:$0]  %s278_s2, 128, %s41_s26, [#allocation6], %s221_s15, %s221_s15, %s222_s16  }
  0x25   :  { %214 = dma.done.wait [#allocation3], 1024  }
  0x26   :  { %215 = vsyncadd [#allocation3], 4294966272 }
  0x27   :  { %216 = dma.done.wait [#allocation6], 256  }
  0x28   :  { %217 = vsyncadd [#allocation6], 4294967040  ;;  %v56_v0 = vld [vmem:[#allocation5] sm:$0xf]  ;;  %vm66_vm0 = vcmask 1040384   ;;  %v59_v2 = vld [vmem:[#allocation2 + $0x8] sm:$0xff] }
  0x29   :  { %v58_v1 = vld [vmem:[#allocation2] sm:$0xff]  ;;  %v64_v3 = vrot.slane %v56_v0, 7  ;;  %vm68_vm1 = vcmask 1044480   ;;  %71 = vst [vmem:[#allocation8 + $0x8] sm:$0xff] %v59_v2  ;;  %v57_v4 = vld [vmem:[#allocation7] sm:$0xf] }
  0x2a   :  { %v61_v5 = vld [vmem:[#allocation2 + $0x10] sm:$0xff]  ;;  %v62_v6 = vld [vmem:[#allocation2 + $0x18] sm:$0xff]  ;;  %v73_v7 = vrot.slane %v57_v4, 3  ;;  %v82_v8 = vld [vmem:[#allocation5 + $0x4] sm:$0xf]  ;;  %s227_s0 = smov [#allocation8]  }
  0x2b   :  { %v86_v9 = vld [vmem:[#allocation2 + $0x20] sm:$0xff]  ;;  %v87_v10 = vld [vmem:[#allocation2 + $0x28] sm:$0xff]  ;;  %s113_s2 = sshll.u32 %s227_s0, 4  ;;  %v67_v11 = vsel %vm66_vm0, %v58_v1, %v64_v3  ;;  %v75_v12 = vsel %vm66_vm0, %v61_v5, %v64_v3  ;;  %v92_v13 = vrot.slane %v82_v8, 7  ;;  %v89_v15 = vld [vmem:[#allocation2 + $0x30] sm:$0xff]  ;;  %s114_s2 = int_to_ptr.vmem [resolvable:$true] %s113_s2 }
  0x2c   :  { %98 = vst [vmem:[#allocation8 + $0x28] sm:$0xff] %v87_v10  ;;  %v84_v14 = vld [vmem:[#allocation7 + $0x4] sm:$0xf]  ;;  %v90_v16 = vld [vmem:[#allocation2 + $0x38] sm:$0xff]  ;;  %v69_v17 = vsel %vm68_vm1, %v67_v11, %v58_v1  ;;  %v76_v18 = vsel %vm68_vm1, %v75_v12, %v73_v7  ;;  %v77_v19 = vsel %vm66_vm0, %v73_v7, %v62_v6  ;;  %s194_s30 = scalar_lea.vmem %s114_s2, 1024  ;;  %p199_p2 = scmp.lt.s32.totalorder %s114_s2, %s114_s2 }
  0x2d   :  { %v100_v20 = vrot.slane %v84_v14, 3  ;;  %70 = vst [vmem:[#allocation8] sm:$0xff] %v69_v17  ;;  %79 = vst [vmem:[#allocation8 + $0x10] sm:$0xff] %v76_v18  ;;  %v94_v21 = vsel %vm66_vm0, %v86_v9, %v92_v13  ;;  %v102_v22 = vsel %vm66_vm0, %v89_v15, %v92_v13  ;;  %p195_p1 = scmp.ne.s32.totalorder %s114_s2, %s194_s30  ;;  %p200_p3 = scmp.lt.s32.totalorder %s194_s30, %s194_s30 }
  0x2e   :  { %80 = vst [vmem:[#allocation8 + $0x18] sm:$0xff] %v77_v19  ;;  %v95_v23 = vsel %vm68_vm1, %v94_v21, %v86_v9 }
  0x2f   :  { %v103_v24 = vsel %vm68_vm1, %v102_v22, %v100_v20  ;;  %v104_v25 = vsel %vm66_vm0, %v100_v20, %v90_v16  ;;  %97 = vst [vmem:[#allocation8 + $0x20] sm:$0xff] %v95_v23  ;;  %p201_p4 = por %p200_p3, %p199_p2 }
  0x30   :  { %106 = vst [vmem:[#allocation8 + $0x30] sm:$0xff] %v103_v24  ;;  %107 = vst [vmem:[#allocation8 + $0x38] sm:$0xff] %v104_v25 }
  0x31   :  { %p202_p5 = pnand %p201_p4, %p195_p1 }
  0x33   :  { %205 = shalt.err (!%p202_p5)
}
  0x34   :  { %119 = dma.vmem_to_hbm [thread:$0]  %s114_s2, 1024, %s279_s3, [#allocation4], %s224_s22, %s224_s22, %s225_s23  }
  0x35   :  { %218 = dma.done.wait [#allocation4], 1024  }
  0x36   :  { %219 = vsyncadd [#allocation4], 4294966272 }
  0x37   :  { %123 = vsyncpa [#allocation3], 1 }
  0x38   :  { %124 = vsyncpa [#allocation6], 1 }
  0x39   :  { %125 = vsyncpa [#allocation4], 1 }

</bundles_post_ra>
